<compile_context>
chip_gen: v5e
topology: v5e:2x2
jax: 0.10.0
libtpu: 0.0.40
codegen_flags: <defaults>
</compile_context>

<pallas_src>
from typing import NamedTuple

import jax
import jax.numpy as jnp
from jax.experimental import pallas as pl
from jax.experimental.pallas import tpu as pltpu


def _round_up(x, m):
    return ((x + m - 1) // m) * m


def _linear_bias_kernel(x_ref, w_ref, b_ref, o_ref):
    """One lane-dense output tile: o = x @ w_tile + bias_tile (f32 accumulate)."""
    j = pl.program_id(0)
    acc = jnp.dot(x_ref[...], w_ref[...], preferred_element_type=jnp.float32)
    o_ref[...] = (acc + b_ref[pl.ds(j, 1), :]).astype(o_ref.dtype)


def _choose_tn(n_lane_blocks, K, w_itemsize, target_tile_bytes):
    """Pick the class-axis tile width (a multiple of 128 lanes)."""
    # Largest number of 128-lane blocks whose (K, tn) weight tile fits the
    # per-tile byte target (the pipeline double-buffers it).
    cap = max(1, min(n_lane_blocks, target_tile_bytes // (128 * K * w_itemsize)))
    # Keep >= 2 grid tiles whenever the head spans >= 2 lane blocks so
    # "parallel" can shard the grid across v7x's two TensorCores.
    if n_lane_blocks >= 2:
        cap = min(cap, (n_lane_blocks + 1) // 2)
    # Cost model: streamed weight bytes (incl. padded-zero columns of a ragged
    # last tile) + per-grid-step overhead (~0.35 us ~= a few hundred KiB of
    # HBM time).  Naturally prefers tn that (nearly) divides the padded width.
    step_bytes = 512 * 1024
    best_d, best_cost = 1, None
    for d in range(1, cap + 1):
        n_tiles = -(-n_lane_blocks // d)  # ceil
        cost = n_tiles * d * 128 * K * w_itemsize + n_tiles * step_bytes
        if best_cost is None or cost < best_cost:
            best_d, best_cost = d, cost
    return best_d * 128


class ClassBlockLinearParams(NamedTuple):
    weight_t: jax.Array  # (K, N_pad), compute dtype (default bf16)
    bias: jax.Array      # (n_tiles, tn), float32
    class_num: int       # true N (unpadded)
    tn: int              # class-axis tile width


def prepare_class_block_linear_params(weight_t, bias, *,
                                      compute_dtype=jnp.bfloat16,
                                      target_tile_bytes=4 << 20,
                                      tn=None):
    """One-time (hoisted) weight preparation.  Do NOT call per forward pass.

    weight_t: (K, N)  Linear weight, already transposed (N = class_num)
    bias:     (N,)    Linear bias
    """
    K, N = weight_t.shape
    assert bias.shape == (N,)
    if compute_dtype is None:
        compute_dtype = weight_t.dtype
    w_itemsize = jnp.dtype(compute_dtype).itemsize

    n_lane_blocks = _round_up(N, 128) // 128
    if tn is None:
        tn = _choose_tn(n_lane_blocks, K, w_itemsize, target_tile_bytes)
    assert tn % 128 == 0
    n_tiles = -(-(n_lane_blocks * 128) // tn)  # ceil over the 128-padded width
    N_pad = n_tiles * tn

    w = weight_t.astype(compute_dtype)
    b = bias.astype(jnp.float32)
    if N_pad != N:
        w = jnp.pad(w, ((0, 0), (0, N_pad - N)))
        b = jnp.pad(b, (0, N_pad - N))
    b = b.reshape(n_tiles, tn)
    return ClassBlockLinearParams(weight_t=w, bias=b, class_num=int(N), tn=int(tn))


def class_block_linear(x, params: ClassBlockLinearParams):
    """Pallas implementation of ClassBlock_Linear.forward: y = x @ W^T + b.

    x: (B, K) input features, K = num_bottleneck.  Returns (B, class_num) in x.dtype.
    """
    out_dtype = x.dtype
    B, K = x.shape
    Kw, N_pad = params.weight_t.shape
    assert K == Kw, "x feature dim must match num_bottleneck"
    n_tiles, tn = params.bias.shape
    assert n_tiles * tn == N_pad

    w_dtype = params.weight_t.dtype
    x = x.astype(w_dtype)

    # Pad the batch to a full sublane tile of the compute dtype
    # (8 rows for f32, 16 for bf16, 32 for int8/fp8).
    sub = 8 * max(1, 4 // jnp.dtype(w_dtype).itemsize)
    B_pad = _round_up(max(B, sub), sub)
    if B_pad != B:
        x = jnp.pad(x, ((0, B_pad - B), (0, 0)))

    out = pl.pallas_call(
        _linear_bias_kernel,
        out_shape=jax.ShapeDtypeStruct((B_pad, N_pad), out_dtype),
        grid_spec=pltpu.PrefetchScalarGridSpec(
            num_scalar_prefetch=0,
            grid=(n_tiles,),
            in_specs=[
                pl.BlockSpec((B_pad, K), lambda j: (0, 0)),      # x resident
                pl.BlockSpec((K, tn), lambda j: (0, j)),         # W streamed over N
                pl.BlockSpec((n_tiles, tn), lambda j: (0, 0)),   # bias resident
            ],
            out_specs=pl.BlockSpec((B_pad, tn), lambda j: (0, j)),
        ),
        compiler_params=pltpu.CompilerParams(
            # N tiles are independent -> parallel (v7x megacore shards them);
            # there is no reduction grid axis.
            dimension_semantics=("parallel",),
            # Covers 2x (K,tn) weight tiles + 2x (B_pad,tn) out tiles +
            # resident x/bias; stays under v7x's 64 MiB physical VMEM
            # (v5e/v6e have 128 MiB).
            vmem_limit_bytes=48 * 1024 * 1024,
        ),
    )(x, params.weight_t, params.bias)

    if B_pad != B or N_pad != params.class_num:
        out = out[:B, :params.class_num]
    return out


def init_class_block_linear_params(key, num_bottleneck, class_num, *,
                                   compute_dtype=jnp.bfloat16, **prep_kwargs):
    """weights_init_classifier: weight ~ Normal(std=0.001), bias = 0.
    Returns (prepared_params, (raw_weight_t_f32, raw_bias_f32))."""
    w = 0.001 * jax.random.normal(key, (class_num, num_bottleneck), dtype=jnp.float32)
    b = jnp.zeros((class_num,), dtype=jnp.float32)
    weight_t = w.T
    params = prepare_class_block_linear_params(
        weight_t, b, compute_dtype=compute_dtype, **prep_kwargs)
    return params, (weight_t, b)


if __name__ == "__main__":
    key = jax.random.PRNGKey(0)
    kx, kw, kx2, kw2 = jax.random.split(key, 4)

    # Small shapes consistent with the module (num_bottleneck defaults to 256).
    batch, num_bottleneck, class_num = 4, 256, 128
    x = jax.random.normal(kx, (batch, num_bottleneck), dtype=jnp.float32)

    # --- case 1: default bf16 weight storage (memory-bound fast path) ---
    params_bf16, (wt, b) = init_class_block_linear_params(kw, num_bottleneck, class_num)
    y = jax.block_until_ready(class_block_linear(x, params_bf16))
    y_ref = x @ wt + b
    assert y.shape == (batch, class_num) and y.dtype == x.dtype
    assert jnp.allclose(y, y_ref, atol=5e-4, rtol=2e-2)

    # --- case 2: f32 weights, matches the jnp reference tightly ---
    params_f32 = prepare_class_block_linear_params(wt, b, compute_dtype=jnp.float32)
    y32 = jax.block_until_ready(class_block_linear(x, params_f32))
    assert jnp.allclose(y32, y_ref, atol=1e-5, rtol=1e-5)

    # --- case 3: unaligned batch / class_num (wrapper pads + slices) ---
    batch2, class_num2 = 5, 100
    x2 = jax.random.normal(kx2, (batch2, num_bottleneck), dtype=jnp.float32)
    params2, (wt2, b2) = init_class_block_linear_params(
        kw2, num_bottleneck, class_num2, compute_dtype=jnp.float32)
    y2 = jax.block_until_ready(class_block_linear(x2, params2))
    y2_ref = x2 @ wt2 + b2
    assert y2.shape == (batch2, class_num2)
    assert jnp.allclose(y2, y2_ref, atol=1e-5, rtol=1e-5)

    # --- case 4: multi-tile grid (class axis spans >= 2 lane blocks) ---
    class_num3 = 384
    params3, (wt3, b3) = init_class_block_linear_params(
        jax.random.fold_in(kw, 3), num_bottleneck, class_num3,
        compute_dtype=jnp.float32)
    assert params3.bias.shape[0] >= 2  # grid really has >= 2 tiles (v7x split)
    y3 = jax.block_until_ready(class_block_linear(x, params3))
    y3_ref = x @ wt3 + b3
    assert y3.shape == (batch, class_num3)
    assert jnp.allclose(y3, y3_ref, atol=1e-5, rtol=1e-5)

    print("KERNEL_OK")
</pallas_src>

<mosaic_0001>
module attributes {stable_mosaic.version = 11 : i64} {
  func.func @_linear_bias_kernel(%arg0: i32, %arg1: memref<16x256xbf16, #tpu.memory_space<vmem>>, %arg2: memref<256x128xbf16, #tpu.memory_space<vmem>>, %arg3: memref<1x128xf32, #tpu.memory_space<vmem>>, %arg4: memref<16x128xf32, #tpu.memory_space<vmem>>) attributes {dimension_semantics = [#tpu.dimension_semantics<parallel>], iteration_bounds = array<i64: 1>, scalar_prefetch = 0 : i64, scratch_operands = 0 : i64, tpu.core_type = #tpu.core_type<tc>, window_params = [{pipeline_mode = #tpu.pipeline_mode<synchronous>, transform_indices = @transform_0, window_bounds = array<i64: 16, 256>}, {transform_indices = @transform_1, window_bounds = array<i64: 256, 128>}, {pipeline_mode = #tpu.pipeline_mode<synchronous>, transform_indices = @transform_2, window_bounds = array<i64: 1, 128>}, {transform_indices = @transform_3, window_bounds = array<i64: 16, 128>}]} {
    %c0 = arith.constant 0 : index
    %c0_0 = arith.constant 0 : index
    %0 = vector.load %arg1[%c0, %c0_0] : memref<16x256xbf16, #tpu.memory_space<vmem>>, vector<16x256xbf16>
    %c0_1 = arith.constant 0 : index
    %c0_2 = arith.constant 0 : index
    %1 = vector.load %arg2[%c0_1, %c0_2] : memref<256x128xbf16, #tpu.memory_space<vmem>>, vector<256x128xbf16>
    %cst = arith.constant dense<0.000000e+00> : vector<16x128xf32>
    %2 = tpu.matmul %0, %1, %cst {dimension_numbers = #tpu.dot_dimension_numbers<[1], [0], [0], [1], [0, 0, 1, 1], [], []>} : vector<16x256xbf16>, vector<256x128xbf16>, vector<16x128xf32> -> vector<16x128xf32>
    %3 = arith.index_cast %arg0 : i32 to index
    %c0_3 = arith.constant 0 : index
    %4 = vector.load %arg3[%3, %c0_3] : memref<1x128xf32, #tpu.memory_space<vmem>>, vector<1x128xf32>
    %5 = vector.broadcast %4 : vector<1x128xf32> to vector<16x128xf32>
    %6 = arith.addf %2, %5 : vector<16x128xf32>
    %c0_4 = arith.constant 0 : index
    %c0_5 = arith.constant 0 : index
    %7 = vector.load %arg4[%c0_4, %c0_5] : memref<16x128xf32, #tpu.memory_space<vmem>>, vector<16x128xf32>
    tpu.vector_store %arg4[%c0_4, %c0_5], %6 {strides = array<i32>} : memref<16x128xf32, #tpu.memory_space<vmem>>, vector<16x128xf32>,
    return
  }
  func.func @transform_0(%arg0: i32) -> (i32, i32) {
    %c0_i32 = arith.constant 0 : i32
    %c0_i32_0 = arith.constant 0 : i32
    %c0_i32_1 = arith.constant 0 : i32
    return %c0_i32, %c0_i32_0 : i32, i32
  }
  func.func @transform_1(%arg0: i32) -> (i32, i32) {
    %c0_i32 = arith.constant 0 : i32
    %c0_i32_0 = arith.constant 0 : i32
    return %c0_i32, %arg0 : i32, i32
  }
  func.func @transform_2(%arg0: i32) -> (i32, i32) {
    %c0_i32 = arith.constant 0 : i32
    %c0_i32_0 = arith.constant 0 : i32
    %c0_i32_1 = arith.constant 0 : i32
    return %c0_i32, %c0_i32_0 : i32, i32
  }
  func.func @transform_3(%arg0: i32) -> (i32, i32) {
    %c0_i32 = arith.constant 0 : i32
    %c0_i32_0 = arith.constant 0 : i32
    return %c0_i32, %arg0 : i32, i32
  }
}

</mosaic_0001>

<bundles_post_ra>
// kernel: tpu_custom_call.1
= control target key start
LH: loop header
LB: loop body
LE: loop exit
PB: predicated region body
PF: predicated region fallthrough
CT: control target
= control target key end

     0   :  { %8 = vsyncpa [#allocation3], 0  ;;  %s462_s0 = inlined_call_operand.hbm [shape: bf16[16,256], index: 0, kind: input, shape index: {}]   ;;  %s463_s1 = inlined_call_operand.hbm [shape: bf16[256,128], index: 1, kind: input, shape index: {}]   ;;  %s464_s2 = inlined_call_operand.vmem [shape: f32[1,128], index: 2, kind: input, shape index: {}]   ;;  %s465_s3 = inlined_call_operand.hbm [shape: f32[16,128], index: 3, kind: output, shape index: {}]  }
   0x1   :  { %9 = vsyncpa [#allocation6], 0 }
   0x2   :  { %10 = vsyncpa [#allocation4], 0  ;;  %s15_s14 = sshll.u32 %s462_s0, 4  ;;  %s417_s15 = smov [#allocation2]   ;;  %s16_s14 = int_to_ptr.hbm [resolvable:$true] %s15_s14 }
   0x3   :  { %s17_s16 = sshll.u32 %s417_s15, 4  ;;  %s28_s19 = sshll.u32 %s463_s1, 4  ;;  %s18_s16 = int_to_ptr.vmem [resolvable:$true] %s17_s16  ;;  %s29_s19 = int_to_ptr.hbm [resolvable:$true] %s28_s19 }
   0x4   :  { %s418_s20 = smov 128   ;;  %s419_s21 = smov 8  }
   0x5   :  { %23 = dma.hbm_to_vmem [thread:$0]  %s16_s14, 256, %s18_s16, [#allocation3], %s418_s20, %s418_s20, %s419_s21  }
   0x6   :  { %s420_s22 = smov [#allocation5]   ;;  %s421_s24 = smov 64  }
   0x7   :  { %s30_s23 = sshll.u32 %s420_s22, 4  ;;  %s422_s0 = smov 4   ;;  %s31_s23 = int_to_ptr.vmem [resolvable:$true] %s30_s23 }
   0x8   :  { %36 = dma.hbm_to_vmem [thread:$0]  %s29_s19, 2048, %s31_s23, [#allocation6], %s421_s24, %s421_s24, %s422_s0  }
   0x9   :  { %411 = dma.done.wait [#allocation3], 256  }
   0xa   :  { %412 = vsyncadd [#allocation3], 4294967040 }
   0xb   :  { %413 = dma.done.wait [#allocation6], 2048  }
   0xc   :  { %414 = vsyncadd [#allocation6], 4294965248  ;;  %v322_v0 = vld [vmem:[#allocation5 + $0x38] sm:$0xff]  ;;  %v321_v2 = vld [vmem:[#allocation5 + $0x30] sm:$0xff]  ;;  %s423_s26 = smov [#allocation7]   ;;  %s227_s30 = sshll.u32 %s465_s3, 4  ;;  %s228_s30 = int_to_ptr.hbm [resolvable:$true] %s227_s30 }
   0xd   :  { %v330_v1 = vld [vmem:[#allocation5 + $0x78] sm:$0xff]  ;;  %191 = vmatpush.bf16.msra.mxu0 %v322_v0  ;;  %v329_v3 = vld [vmem:[#allocation5 + $0x70] sm:$0xff]  ;;  %v320_v4 = vld [vmem:[#allocation5 + $0x28] sm:$0xff]  ;;  %s225_s27 = sshll.u32 %s423_s26, 4  ;;  %s226_s27 = int_to_ptr.vmem [resolvable:$true] %s225_s27 }
   0xe   :  { %205 = vmatpush.bf16.msra.mxu1 %v330_v1  ;;  %v328_v5 = vld [vmem:[#allocation5 + $0x68] sm:$0xff]  ;;  %v319_v6 = vld [vmem:[#allocation5 + $0x20] sm:$0xff]  ;;  %v318_v8 = vld [vmem:[#allocation5 + $0x18] sm:$0xff] }
   0xf   :  { %v327_v7 = vld [vmem:[#allocation5 + $0x60] sm:$0xff]  ;;  %v326_v9 = vld [vmem:[#allocation5 + $0x58] sm:$0xff]  ;;  %v317_v10 = vld [vmem:[#allocation5 + $0x10] sm:$0xff] }
  0x10   :  { %v325_v11 = vld [vmem:[#allocation5 + $0x50] sm:$0xff]  ;;  %v316_v12 = vld [vmem:[#allocation5 + $0x8] sm:$0xff]  ;;  %v315_v14 = vld [vmem:[#allocation5] sm:$0xff] }
  0x11   :  { %192 = vmatpush.bf16.msra.mxu0 %v321_v2  ;;  %v324_v13 = vld [vmem:[#allocation5 + $0x48] sm:$0xff]  ;;  %v323_v15 = vld [vmem:[#allocation5 + $0x40] sm:$0xff]  ;;  %v243_v16 = vld [vmem:[#allocation2] sm:$0xf] }
  0x12   :  { %206 = vmatpush.bf16.msra.mxu1 %v329_v3  ;;  %v314_v17 = vld [vmem:[#allocation2 + $0x4] sm:$0xf0]  ;;  %v313_v18 = vld [vmem:[#allocation2 + $0x4] sm:$0xf]  ;;  %v245_v19 = vld [vmem:[#allocation2 + $0x8] sm:$0xf0] }
  0x13   :  { %v244_v20 = vor.u32 %v314_v17, %v243_v16  ;;  %v248_v21 = vor.u32 %v313_v18, %v245_v19  ;;  %v338_v22 = vld [vmem:[%s464_s2] ss:$0 sm:$0xff] }
  0x15   :  { %193 = vmatpush.bf16.msra.mxu0 %v320_v4 }
  0x16   :  { %207 = vmatpush.bf16.msra.mxu1 %v328_v5 }
  0x19   :  { %194 = vmatpush.bf16.msra.mxu0 %v319_v6 }
  0x1a   :  { %208 = vmatpush.bf16.msra.mxu1 %v327_v7 }
  0x1d   :  { %195 = vmatpush.bf16.msra.mxu0 %v318_v8 }
  0x1e   :  { %209 = vmatpush.bf16.msra.mxu1 %v326_v9 }
  0x21   :  { %196 = vmatpush.bf16.msra.mxu0 %v317_v10 }
  0x22   :  { %210 = vmatpush.bf16.msra.mxu1 %v325_v11 }
  0x25   :  { %197 = vmatpush.bf16.msra.mxu0 %v316_v12 }
  0x26   :  { %211 = vmatpush.bf16.msra.mxu1 %v324_v13 }
  0x29   :  { %198 = vmatpush.bf16.msra.mxu0 %v315_v14 }
  0x2a   :  { %212 = vmatpush.bf16.msra.mxu1 %v323_v15 }
  0x2c   :  { %199 = vmatmul.bf16.vlgmr.msra.gmra.mxu0 %v244_v20 }
  0x2d   :  { %213 = vmatmul.bf16.vlgmr.msra.gmra.mxu1 %v248_v21 }
  0xa9   :  { %v200_v23 = vpop.f32.mrf.mxu0 }
  0xaa   :  { %v214_v24 = vpop.f32.mrf.mxu1  ;;  %v201_v25 = vadd.f32 %v338_v22, %v200_v23 }
  0xac   :  { %v215_v26 = vadd.f32 %v214_v24, %v201_v25 }
  0xae   :  { %219 = vst [vmem:[#allocation7] sm:$0xff] %v215_v26 }
  0xb1   :  { %v202_v27 = vpop.f32.mrf.mxu0 }
  0xb2   :  { %v203_v28 = vadd.f32 %v338_v22, %v202_v27  ;;  %v216_v29 = vpop.f32.mrf.mxu1 }
  0xb4   :  { %v217_v30 = vadd.f32 %v216_v29, %v203_v28 }
  0xb6   :  { %220 = vst [vmem:[#allocation7 + $0x8] sm:$0xff] %v217_v30 }
  0xb7   :  { %233 = dma.vmem_to_hbm [thread:$0]  %s226_s27, 256, %s228_s30, [#allocation4], %s418_s20, %s418_s20, %s419_s21  }
  0xb8   :  { %415 = dma.done.wait [#allocation4], 256  }
  0xb9   :  { %416 = vsyncadd [#allocation4], 4294967040 }
  0xba   :  { %238 = vsyncpa [#allocation3], 1 }
  0xbb   :  { %239 = vsyncpa [#allocation6], 1 }
  0xbc   :  { %240 = vsyncpa [#allocation4], 1 }

</bundles_post_ra>
